<compile_context>
chip_gen: v5e
topology: v5e:2x2
jax: 0.10.0
libtpu: 0.0.40
codegen_flags: <defaults>
</compile_context>

<pallas_src>
import jax
import jax.numpy as jnp
from jax.experimental import pallas as pl
from jax.experimental.pallas import tpu as pltpu


# ---------------- config (mirrors the torch `config` object) ----------------
class config:
    context_window = 16
    num_head = 2
    head_size = 128


_Q_CHUNK = 8        # sublane-sized query chunk
_EPS = 1e-12        # torch F.normalize eps


# ------------------------------- kernel body --------------------------------
def bar_kernel(a_ref, b_ref, o_ref):
    # a_ref / b_ref / o_ref: (1, T, D) block = one (batch, head) pair.
    T = config.context_window

    for qc in range(T // _Q_CHUNK):                      # static query chunks
        q0 = qc * _Q_CHUNK
        klen = q0 + _Q_CHUNK                             # keys that can be unmasked

        a_q = a_ref[0, q0:q0 + _Q_CHUNK, :].astype(jnp.float32)   # (QC, D)
        b_k = b_ref[0, 0:klen, :].astype(jnp.float32)              # (klen, D)

        # s[q, k, d] = a[q0+q, d] + b[k, d]
        s = a_q[:, None, :] + b_k[None, :, :]                      # (QC, klen, D)

        # 1 / max(||s||_2, eps)  via rsqrt of the clamped squared norm
        sumsq = jnp.sum(s * s, axis=-1, keepdims=True)             # (QC, klen, 1)
        inv = jax.lax.rsqrt(jnp.maximum(sumsq, _EPS * _EPS))

        e = jnp.exp(s * inv)                                       # (QC, klen, D)

        # causal mask (q >= k) on the remaining (diagonal-block) keys only:
        # keys < q0 are always valid for queries >= q0.
        q_idx = jax.lax.broadcasted_iota(jnp.int32, (_Q_CHUNK, klen, 1), 0) + q0
        k_idx = jax.lax.broadcasted_iota(jnp.int32, (_Q_CHUNK, klen, 1), 1)
        e = jnp.where(q_idx >= k_idx, e, 0.0)

        # sum over keys -> (QC, D), full-lane write to the output block
        o_ref[0, q0:q0 + _Q_CHUNK, :] = jnp.sum(e, axis=1).astype(o_ref.dtype)


# ------------------------------- wrapper -------------------------------------
def bar_forward(a, b):
    T = config.context_window
    H = config.num_head
    D = config.head_size
    HD = H * D
    B = a.shape[0]
    assert a.shape == (B, T, HD) and b.shape == (B, T, HD)
    assert T % _Q_CHUNK == 0 and D % 128 == 0

    itemsize = jnp.dtype(a.dtype).itemsize
    n_pairs = T * (T + 1) // 2                     # causal (q, k) pairs actually computed
    cost = pl.CostEstimate(
        flops=5 * B * H * n_pairs * D,             # add, square, reduce, scale, key-sum
        transcendentals=B * H * n_pairs * (D + 1), # exp per element + rsqrt per pair
        bytes_accessed=3 * B * T * HD * itemsize,  # a, b in; out
    )

    return pl.pallas_call(
        bar_kernel,
        out_shape=jax.ShapeDtypeStruct((B, T, HD), a.dtype),
        grid_spec=pltpu.PrefetchScalarGridSpec(
            num_scalar_prefetch=0,
            grid=(B, H),
            in_specs=[
                pl.BlockSpec((1, T, D), lambda bi, hi: (bi, 0, hi)),
                pl.BlockSpec((1, T, D), lambda bi, hi: (bi, 0, hi)),
            ],
            out_specs=pl.BlockSpec((1, T, D), lambda bi, hi: (bi, 0, hi)),
        ),
        compiler_params=pltpu.CompilerParams(
            dimension_semantics=("parallel", "parallel")),
        cost_estimate=cost,
    )(a, b)


# ------------------------------ pure-JAX reference ---------------------------
def bar_reference(a, b):
    T = config.context_window
    H = config.num_head
    D = config.head_size
    B = a.shape[0]
    a_r = a.reshape(B, T, H, D).transpose(0, 2, 1, 3)      # (B, H, T, D)
    b_r = b.reshape(B, T, H, D).transpose(0, 2, 1, 3)
    s = a_r[:, :, :, None, :] + b_r[:, :, None, :, :]      # (B, H, T, T, D)
    norm = jnp.maximum(jnp.linalg.norm(s, axis=-1, keepdims=True), _EPS)
    e = jnp.exp(s / norm)
    mask = jnp.arange(T)[:, None] >= jnp.arange(T)[None, :]
    out = jnp.where(mask[None, None, :, :, None], e, 0.0).sum(axis=3)   # (B, H, T, D)
    return out.transpose(0, 2, 1, 3).reshape(B, T, H * D)


if __name__ == "__main__":
    B = 2
    T = config.context_window
    H = config.num_head
    D = config.head_size

    key = jax.random.PRNGKey(0)
    ka, kb = jax.random.split(key)
    a = jax.random.normal(ka, (B, T, H * D), dtype=jnp.float32)
    b = jax.random.normal(kb, (B, T, H * D), dtype=jnp.float32)

    out = bar_forward(a, b)
    out = jax.block_until_ready(out)

    ref = bar_reference(a, b)
    assert out.shape == (B, T, H * D)
    assert jnp.allclose(out, ref, atol=1e-4, rtol=1e-4), "mismatch vs reference"

    print("KERNEL_OK")
</pallas_src>

<mosaic_0001>
module attributes {stable_mosaic.version = 11 : i64} {
  func.func @bar_kernel(%arg0: i32, %arg1: i32, %arg2: memref<1x16x128xf32, #tpu.memory_space<vmem>>, %arg3: memref<1x16x128xf32, #tpu.memory_space<vmem>>, %arg4: memref<1x16x128xf32, #tpu.memory_space<vmem>>) attributes {dimension_semantics = [#tpu.dimension_semantics<parallel>, #tpu.dimension_semantics<parallel>], iteration_bounds = array<i64: 2, 2>, scalar_prefetch = 0 : i64, scratch_operands = 0 : i64, tpu.core_type = #tpu.core_type<tc>, window_params = [{transform_indices = @transform_0, window_bounds = array<i64: 1, 16, 128>}, {transform_indices = @transform_1, window_bounds = array<i64: 1, 16, 128>}, {transform_indices = @transform_2, window_bounds = array<i64: 1, 16, 128>}]} {
    %c0 = arith.constant 0 : index
    %c0_0 = arith.constant 0 : index
    %c0_1 = arith.constant 0 : index
    %0 = vector.load %arg2[%c0, %c0_0, %c0_1] : memref<1x16x128xf32, #tpu.memory_space<vmem>>, vector<1x8x128xf32>
    %1 = vector.shape_cast %0 : vector<1x8x128xf32> to vector<8x128xf32>
    %c0_2 = arith.constant 0 : index
    %c0_3 = arith.constant 0 : index
    %c0_4 = arith.constant 0 : index
    %2 = vector.load %arg3[%c0_2, %c0_3, %c0_4] : memref<1x16x128xf32, #tpu.memory_space<vmem>>, vector<1x8x128xf32>
    %3 = vector.shape_cast %2 : vector<1x8x128xf32> to vector<8x128xf32>
    %4 = vector.shape_cast %1 : vector<8x128xf32> to vector<8x1x128xf32>
    %5 = vector.shape_cast %3 : vector<8x128xf32> to vector<1x8x128xf32>
    %6 = vector.broadcast %4 : vector<8x1x128xf32> to vector<8x8x128xf32>
    %7 = vector.broadcast %5 : vector<1x8x128xf32> to vector<8x8x128xf32>
    %8 = arith.addf %6, %7 : vector<8x8x128xf32>
    %9 = arith.mulf %8, %8 : vector<8x8x128xf32>
    %cst = arith.constant dense<0.000000e+00> : vector<8x8xf32>
    %10 = vector.multi_reduction <add>, %9, %cst [2] : vector<8x8x128xf32> to vector<8x8xf32>
    %11 = vector.shape_cast %10 : vector<8x8xf32> to vector<8x8x1xf32>
    %cst_5 = arith.constant 1.000000e-24 : f32
    %12 = vector.broadcast %cst_5 : f32 to vector<8x8x1xf32>
    %13 = arith.maximumf %11, %12 : vector<8x8x1xf32>
    %14 = math.rsqrt %13 : vector<8x8x1xf32>
    %15 = vector.broadcast %14 : vector<8x8x1xf32> to vector<8x8x128xf32>
    %16 = arith.mulf %8, %15 : vector<8x8x128xf32>
    %17 = math.exp %16 : vector<8x8x128xf32>
    %18 = tpu.iota {dimensions = array<i32: 0>} : vector<8x8x1xi32>
    %c0_i32 = arith.constant 0 : i32
    %19 = vector.broadcast %c0_i32 : i32 to vector<8x8x1xi32>
    %20 = arith.addi %18, %19 : vector<8x8x1xi32>
    %21 = tpu.iota {dimensions = array<i32: 1>} : vector<8x8x1xi32>
    %22 = arith.cmpi sge, %20, %21 : vector<8x8x1xi32>
    %cst_6 = arith.constant 0.000000e+00 : f32
    %23 = vector.shape_cast %22 : vector<8x8x1xi1> to vector<8x8x1xi1>
    %24 = vector.broadcast %23 : vector<8x8x1xi1> to vector<8x8x128xi1>
    %25 = vector.broadcast %cst_6 : f32 to vector<8x8x128xf32>
    %26 = arith.select %24, %17, %25 : vector<8x8x128xi1>, vector<8x8x128xf32>
    %cst_7 = arith.constant dense<0.000000e+00> : vector<8x128xf32>
    %27 = vector.multi_reduction <add>, %26, %cst_7 [1] : vector<8x8x128xf32> to vector<8x128xf32>
    %c0_8 = arith.constant 0 : index
    %c0_9 = arith.constant 0 : index
    %c0_10 = arith.constant 0 : index
    %28 = vector.load %arg4[%c0_8, %c0_9, %c0_10] : memref<1x16x128xf32, #tpu.memory_space<vmem>>, vector<1x8x128xf32>
    %29 = vector.shape_cast %28 : vector<1x8x128xf32> to vector<8x128xf32>
    %30 = vector.shape_cast %27 : vector<8x128xf32> to vector<1x8x128xf32>
    tpu.vector_store %arg4[%c0_8, %c0_9, %c0_10], %30 {strides = array<i32>} : memref<1x16x128xf32, #tpu.memory_space<vmem>>, vector<1x8x128xf32>,
    %c0_11 = arith.constant 0 : index
    %c8 = arith.constant 8 : index
    %c0_12 = arith.constant 0 : index
    %31 = vector.load %arg2[%c0_11, %c8, %c0_12] : memref<1x16x128xf32, #tpu.memory_space<vmem>>, vector<1x8x128xf32>
    %32 = vector.shape_cast %31 : vector<1x8x128xf32> to vector<8x128xf32>
    %c0_13 = arith.constant 0 : index
    %c0_14 = arith.constant 0 : index
    %c0_15 = arith.constant 0 : index
    %33 = vector.load %arg3[%c0_13, %c0_14, %c0_15] : memref<1x16x128xf32, #tpu.memory_space<vmem>>, vector<1x16x128xf32>
    %34 = vector.shape_cast %33 : vector<1x16x128xf32> to vector<16x128xf32>
    %35 = vector.shape_cast %32 : vector<8x128xf32> to vector<8x1x128xf32>
    %36 = vector.shape_cast %34 : vector<16x128xf32> to vector<1x16x128xf32>
    %37 = vector.broadcast %35 : vector<8x1x128xf32> to vector<8x16x128xf32>
    %38 = vector.broadcast %36 : vector<1x16x128xf32> to vector<8x16x128xf32>
    %39 = arith.addf %37, %38 : vector<8x16x128xf32>
    %40 = arith.mulf %39, %39 : vector<8x16x128xf32>
    %cst_16 = arith.constant dense<0.000000e+00> : vector<8x16xf32>
    %41 = vector.multi_reduction <add>, %40, %cst_16 [2] : vector<8x16x128xf32> to vector<8x16xf32>
    %42 = vector.shape_cast %41 : vector<8x16xf32> to vector<8x16x1xf32>
    %cst_17 = arith.constant 1.000000e-24 : f32
    %43 = vector.broadcast %cst_17 : f32 to vector<8x16x1xf32>
    %44 = arith.maximumf %42, %43 : vector<8x16x1xf32>
    %45 = math.rsqrt %44 : vector<8x16x1xf32>
    %46 = vector.broadcast %45 : vector<8x16x1xf32> to vector<8x16x128xf32>
    %47 = arith.mulf %39, %46 : vector<8x16x128xf32>
    %48 = math.exp %47 : vector<8x16x128xf32>
    %49 = tpu.iota {dimensions = array<i32: 0>} : vector<8x16x1xi32>
    %c8_i32 = arith.constant 8 : i32
    %50 = vector.broadcast %c8_i32 : i32 to vector<8x16x1xi32>
    %51 = arith.addi %49, %50 : vector<8x16x1xi32>
    %52 = tpu.iota {dimensions = array<i32: 1>} : vector<8x16x1xi32>
    %53 = arith.cmpi sge, %51, %52 : vector<8x16x1xi32>
    %cst_18 = arith.constant 0.000000e+00 : f32
    %54 = vector.shape_cast %53 : vector<8x16x1xi1> to vector<8x16x1xi1>
    %55 = vector.broadcast %54 : vector<8x16x1xi1> to vector<8x16x128xi1>
    %56 = vector.broadcast %cst_18 : f32 to vector<8x16x128xf32>
    %57 = arith.select %55, %48, %56 : vector<8x16x128xi1>, vector<8x16x128xf32>
    %cst_19 = arith.constant dense<0.000000e+00> : vector<8x128xf32>
    %58 = vector.multi_reduction <add>, %57, %cst_19 [1] : vector<8x16x128xf32> to vector<8x128xf32>
    %c0_20 = arith.constant 0 : index
    %c8_21 = arith.constant 8 : index
    %c0_22 = arith.constant 0 : index
    %59 = vector.load %arg4[%c0_20, %c8_21, %c0_22] : memref<1x16x128xf32, #tpu.memory_space<vmem>>, vector<1x8x128xf32>
    %60 = vector.shape_cast %59 : vector<1x8x128xf32> to vector<8x128xf32>
    %61 = vector.shape_cast %58 : vector<8x128xf32> to vector<1x8x128xf32>
    tpu.vector_store %arg4[%c0_20, %c8_21, %c0_22], %61 {strides = array<i32>} : memref<1x16x128xf32, #tpu.memory_space<vmem>>, vector<1x8x128xf32>,
    return
  }
  func.func @transform_0(%arg0: i32, %arg1: i32) -> (i32, i32, i32) {
    %c0_i32 = arith.constant 0 : i32
    %c0_i32_0 = arith.constant 0 : i32
    return %arg0, %c0_i32, %arg1 : i32, i32, i32
  }
  func.func @transform_1(%arg0: i32, %arg1: i32) -> (i32, i32, i32) {
    %c0_i32 = arith.constant 0 : i32
    %c0_i32_0 = arith.constant 0 : i32
    return %arg0, %c0_i32, %arg1 : i32, i32, i32
  }
  func.func @transform_2(%arg0: i32, %arg1: i32) -> (i32, i32, i32) {
    %c0_i32 = arith.constant 0 : i32
    %c0_i32_0 = arith.constant 0 : i32
    return %arg0, %c0_i32, %arg1 : i32, i32, i32
  }
}

</mosaic_0001>

<bundles_post_ra>
// kernel: tpu_custom_call.1
= control target key start
LH: loop header
LB: loop body
LE: loop exit
PB: predicated region body
PF: predicated region fallthrough
CT: control target
= control target key end

     0   :  { %s2290_s0 = inlined_call_operand.hbm [shape: f32[2,16,256], index: 0, kind: input, shape index: {}]   ;;  %s2291_s1 = inlined_call_operand.hbm [shape: f32[2,16,256], index: 1, kind: input, shape index: {}]   ;;  %s2292_s2 = inlined_call_operand.hbm [shape: f32[2,16,256], index: 2, kind: output, shape index: {}]  }
   0x1   :  { %2296 = sst [smem:[#allocation14_spill]] %s2290_s0 }
   0x2   :  { %7 = vsyncpa [#allocation3], 0 }
   0x3   :  { %9 = vsyncpa [#allocation3 + $0x1], 0 }
   0x4   :  { %10 = vsyncpa [#allocation6], 0 }
   0x5   :  { %12 = vsyncpa [#allocation6 + $0x1], 0 }
   0x6   :  { %13 = vsyncpa [#allocation4], 0 }
   0x7   :  { %15 = vsyncpa [#allocation4 + $0x1], 0  ;;  %s1474_s9 = smov 0   ;;  %s1476_s10 = smov 0  }
   0x8   :  { %s1478_s11 = smov 0   ;;  %s1480_s12 = smov 0  }
   0x9   :  { %s1482_s13 = smov 0   ;;  %s1484_s14 = smov 0  }
   0xa   :  { %s1486_s15 = smov 0   ;;  %s1488_s16 = smov 0  }
   0xb LB: > { %2297 = sst [smem:[#allocation11_spill]] %s1447_s15  ;;  %s1085_s17 = sadd.s32 4294967295, %s1451_s16   ;;  %s1451_s16 = sphi %s1488_s16, %s21_s16   ;;  %s1447_s15 = sphi %s1486_s15, %s2340_s15   ;;  %s1443_s14 = sphi %s1484_s14, %s2345_s14   ;;  %s1439_s13 = sphi %s1482_s13, %s2338_s13   ;;  %s1435_s12 = sphi %s1480_s12, %s2344_s12   ;;  %s1431_s11 = sphi %s1478_s11, %s2343_s11   ;;  %s1427_s10 = sphi %s1476_s10, %s2342_s10   ;;  %s1423_s9 = sphi %s1474_s9, %s2341_s9  }
   0xc   : > { %s1086_s18 = sadd.s32 4294967294, %s1451_s16   ;;  %s30_s19 = sadd.s32 1, %s1443_s14 }
   0xd   : > { %s33_s20 = sadd.s32 1, %s1447_s15  ;;  %p31_p0 = scmp.ge.s32.totalorder %s30_s19, 2 }
   0xe   : > { %s42_s21 = sadd.s32 1, %s1431_s11  ;;  %p49_p1 = scmp.ne.s32.totalorder %s1431_s11, %s1427_s10 }
   0xf   : > { %p50_p2 = scmp.eq.s32.totalorder %s1451_s16, 0  ;;  %s2347_s19 = smov (%p31_p0, %s30_s19), 0 }
  0x10   : > { %2298 = sst [smem:[#allocation12_spill]] %s2347_s19  ;;  %s2349_s20 = smov (!%p31_p0, %s33_s20), %s1447_s15 }
  0x11   : > { %s38_s22 = ssub.s32 %s1443_s14, %s2347_s19  ;;  %p1527_p3 = por %p50_p2, %p49_p1 }
  0x12   : > { %p35_p4 = scmp.ge.s32.totalorder %s2349_s20, 2  ;;  %p55_p5 = scmp.ne.s32.totalorder %s1427_s10, %s1423_s9 }
  0x13   : > { %p56_p6 = scmp.eq.s32.totalorder %s1085_s17, 0  ;;  %p109_p7 = scmp.eq.s32.totalorder %s1085_s17, 3 }
  0x14   : > { %s2351_s20 = smov (%p35_p4, %s2349_s20), 0  ;;  %p115_p10 = scmp.eq.s32.totalorder %s1086_s18, 3 }
  0x15   : > { %2300 = sst [smem:[#allocation13_spill]] %s2351_s20  ;;  %p1535_p8 = por %p56_p6, %p55_p5 }
  0x16   : > { %p1539_p9 = por %p109_p7, %p49_p1  ;;  %s37_s26 = ssub.s32 %s1447_s15, %s2351_s20 }
  0x17   : > { %s39_s27 = sor.u32 %s38_s22, %s37_s26  ;;  %p1545_p12 = por %p115_p10, %p55_p5 }
  0x18   : > { %p40_p11 = scmp.eq.s32.totalorder %s39_s27, 0  ;;  %p1121_p13 = scmp.lt.s32.totalorder %s1451_s16, 4 }
  0x19   : > { %s1551_s29 = sand.u32 1, %s1431_s11   ;;  %s1090_s4 = sshll.u32 %s1447_s15, 2 }
  0x1a   : > { %s1554_s30 = scalar_select %p40_p11, %s1431_s11, %s42_s21  }
  0x1b   : > { %s1089_s3 = sshll.u32 %s1551_s29, 4  ;;  %s143_s5 = sadd.s32 %s1443_s14, %s1090_s4 }
  0x1c   : > { %s139_s6 = scalar_lea.vmem [#allocation2], %s1089_s3  ;;  %s1091_s8 = sshll.u32 %s143_s5, 3 }
  0x1d   : > { %s148_s7 = sshll.u32 %s139_s6, 4  ;;  %s2304_s0 = sld [smem:[#allocation14_spill]]  ;;  %s149_s7 = int_to_ptr.vmem [resolvable:$true] %s148_s7 }
  0x1e   : > { %p1564_p0 = pnand %p1121_p13, %p1527_p3  ;;  %s136_s27 = scalar_lea.sflag [#allocation3], %s1551_s29 }
  0x1f   : > { %s1453_s4 = smov 256   ;;  %s1454_s20 = smov 128  }
  0x20   : > { %s1455_s6 = smov 8   ;;  %p1095_p1 = scmp.ge.s32.totalorder %s1451_s16, 1 }
  0x21   : > { %p179_p2 = scmp.lt.s32.totalorder %s1451_s16, 5  ;;  %s168_s17 = scalar_lea.hbm %s2291_s1, %s1091_s8 }
  0x22   : > { %s169_s18 = sshll.u32 %s168_s17, 4  ;;  %s170_s18 = int_to_ptr.hbm [resolvable:$true] %s169_s18 }
  0x23   : > { %s145_s22 = scalar_lea.hbm %s2304_s0, %s1091_s8  ;;  %p180_p4 = pnand %p1095_p1, %p179_p2 }
  0x24   : > { %s146_s21 = sshll.u32 %s145_s22, 4  ;;  %s162_s0 = scalar_lea.vmem [#allocation5], %s1089_s3  ;;  %s147_s21 = int_to_ptr.hbm [resolvable:$true] %s146_s21 }
  0x25   : > { %1113 = dma.hbm_to_vmem [thread:$0]  (!%p1564_p0), %s147_s21, 256, %s149_s7, %s136_s27, %s1453_s4, %s1454_s20, %s1455_s6  }
  0x26   : > { %s171_s19 = sshll.u32 %s162_s0, 4  ;;  %s159_s22 = scalar_lea.sflag [#allocation6], %s1551_s29  ;;  %s172_s19 = int_to_ptr.vmem [resolvable:$true] %s171_s19 }
  0x27   : > { %1116 = dma.hbm_to_vmem [thread:$0]  (!%p1564_p0), %s170_s18, 256, %s172_s19, %s159_s22, %s1453_s4, %s1454_s20, %s1455_s6  }
  0x28   : > { %183 = sbr.rel (%p180_p4) target bundleno = 306 (0x132), region = 28  ;;  %s1580_s15 = sand.u32 (!%p180_p4), 1, %s1427_s10  }
  0x29   : > { %s1583_s7 = sshll.u32 (!%p180_p4), %s1580_s15, 4  ;;  %s186_s21 = scalar_lea.sflag (!%p180_p4), [#allocation3], %s1580_s15 }
  0x2a   : > { %s189_s8 = scalar_lea.vmem (!%p180_p4), [#allocation2], %s1583_s7 }
  0x2d   : > { %1410 = dma.done.wait (%p1535_p8), %s186_s21, 256  }
  0x2e   : > { %1412 = vsyncadd (%p1535_p8), %s186_s21, 4294967040  ;;  %s196_s0 = scalar_lea.sflag [#allocation6], %s1580_s15  ;;  %s199_s19 = scalar_lea.vmem [#allocation5], %s1583_s7 }
  0x2f   : > { %1414 = dma.done.wait (%p1535_p8), %s196_s0, 256  }
  0x30   : > { %1416 = vsyncadd (%p1535_p8), %s196_s0, 4294967040  ;;  %v1597_v0 = vld [vmem:[%s189_s8 + $0x8] sm:$0xff]  ;;  %v1601_v2 = vld [vmem:[%s199_s19] sm:$0xff]  ;;  %s1100_s20 = sshll.u32 %s1439_s13, 2  ;;  %s225_s26 = scalar_lea.vmem [#allocation7], %s1583_s7 }
  0x31   : > { %v1599_v1 = vld [vmem:[%s199_s19 + $0x8] sm:$0xff]  ;;  %v513_v3 = vperm.slane %v1597_v0, 0  ;;  %v1604_v4 = vld [vmem:[%s189_s8] sm:$0xff]  ;;  %v506_v5 = vrot.slane %v1597_v0, 1  ;;  %v507_v6 = vrot.slane %v1597_v0, 2  ;;  %v508_v20 = vrot.slane %v1597_v0, 3  ;;  %s966_s24 = sadd.s32 %s1435_s12, %s1100_s20 }
  0x32   : > { %v236_v7 = vperm.slane %v1604_v4, 0  ;;  %v229_v18 = vrot.slane %v1604_v4, 1  ;;  %v230_v28 = vrot.slane %v1604_v4, 2  ;;  %v509_v30 = vrot.slane %v1597_v0, 4  ;;  %s1101_s13 = sshll.u32 %s966_s24, 3  ;;  %s969_s27 = sshll.u32 %s225_s26, 4  ;;  %s970_s27 = int_to_ptr.vmem [resolvable:$true] %s969_s27 }
  0x33   : > { %v1610_v8 = vadd.f32 %v513_v3, %v1599_v1  ;;  %v1613_v9 = vadd.f32 %v513_v3, %v1601_v2  ;;  %v514_v10 = vperm.slane %v506_v5, 0  ;;  %v515_v12 = vperm.slane %v507_v6, 0  ;;  %s968_s3 = scalar_lea.hbm %s2292_s2, %s1101_s13  ;;  %s956_s6 = scalar_lea.sflag [#allocation4], %s1580_s15 }
  0x34   : > { %v1616_v11 = vadd.f32 %v1601_v2, %v236_v7  ;;  %v237_v23 = vperm.slane %v229_v18, 0  ;;  %v516_v25 = vperm.slane %v508_v20, 0  ;;  %v238_v33 = vperm.slane %v230_v28, 0  ;;  %s971_s4 = sshll.u32 %s968_s3, 4  ;;  %s1369_s22 = scalar_lea.hbm %s2292_s2, 64  ;;  %s972_s4 = int_to_ptr.hbm [resolvable:$true] %s971_s4 }
  0x35   : > { %v546_v13 = vmul.f32 %v1610_v8, %v1610_v8  ;;  %v545_v14 = vmul.f32 %v1613_v9, %v1613_v9  ;;  %v1625_v16 = vadd.f32 %v514_v10, %v1599_v1  ;;  %v1628_v17 = vadd.f32 %v514_v10, %v1601_v2  ;;  %s1363_s5 = sshra.s32 %s972_s4, 4  ;;  %s1364_s5 = int_to_ptr.hbm [resolvable:$true] %s1363_s5 }
  0x36   : > { %v260_v15 = vmul.f32 %v1616_v11, %v1616_v11  ;;  %v1632_v19 = vadd.f32 %v515_v12, %v1599_v1  ;;  %v1642_v26 = vadd.f32 %v515_v12, %v1601_v2  ;;  %v1645_v27 = vadd.f32 %v1601_v2, %v237_v23  ;;  %s1365_s23 = scalar_lea.hbm %s1364_s5, 16  ;;  %p1370_p7 = scmp.lt.s32.totalorder %s1364_s5, %s2292_s2 }
  0x37   : > { %563 = vadd.xlane.f32.xlu0 %v546_v13  ;;  %561 = vadd.xlane.f32.xlu1 %v545_v14  ;;  %v548_v21 = vmul.f32 %v1625_v16, %v1625_v16  ;;  %v547_v22 = vmul.f32 %v1628_v17, %v1628_v17  ;;  %v1649_v29 = vadd.f32 %v516_v25, %v1599_v1  ;;  %v517_v35 = vperm.slane %v509_v30, 0  ;;  %p1366_p3 = scmp.ne.s32.totalorder %s1364_s5, %s1365_s23  ;;  %p1371_p8 = scmp.lt.s32.totalorder %s1369_s22, %s1365_s23 }
  0x38   : > { %268 = vadd.xlane.f32.xlu2 %v260_v15  ;;  %v550_v24 = vmul.f32 %v1632_v19, %v1632_v19  ;;  %v549_v31 = vmul.f32 %v1642_v26, %v1642_v26  ;;  %v261_v32 = vmul.f32 %v1645_v27, %v1645_v27  ;;  %v1659_v36 = vadd.f32 %v516_v25, %v1601_v2 }
  0x39   : > { %v552_v34 = vmul.f32 %v1649_v29, %v1649_v29  ;;  %v1662_v37 = vadd.f32 %v1601_v2, %v238_v33  ;;  %v231_v38 = vrot.slane %v1604_v4, 3  ;;  %v1666_v39 = vadd.f32 %v517_v35, %v1599_v1  ;;  %p1367_p5 = pnand %p1366_p3, %p1539_p9  ;;  %p1372_p10 = por %p1371_p8, %p1370_p7 }
  0x3a   : > { %v510_v40 = vrot.slane %v1597_v0, 5  ;;  %v551_v41 = vmul.f32 %v1659_v36, %v1659_v36  ;;  %v1676_v46 = vadd.f32 %v517_v35, %v1601_v2  ;;  %v232_v48 = vrot.slane %v1604_v4, 4 }
  0x3b   : > { %v262_v42 = vmul.f32 %v1662_v37, %v1662_v37  ;;  %v239_v43 = vperm.slane %v231_v38, 0  ;;  %v554_v44 = vmul.f32 %v1666_v39, %v1666_v39  ;;  %v511_v50 = vrot.slane %v1597_v0, 6  ;;  %p1368_p6 = pneg %p1367_p5 }
  0x3c   : > { %v518_v45 = vperm.slane %v510_v40, 0  ;;  %v553_v51 = vmul.f32 %v1676_v46, %v1676_v46  ;;  %v240_v53 = vperm.slane %v232_v48, 0  ;;  %v233_v58 = vrot.slane %v1604_v4, 5 }
  0x3d   : > { %v1679_v47 = vadd.f32 %v1601_v2, %v239_v43  ;;  %v519_v55 = vperm.slane %v511_v50, 0  ;;  %v234_v60 = vrot.slane %v1604_v4, 6  ;;  %v512_v10 = vrot.slane %v1597_v0, 7  ;;  %p1373_p11 = pnand %p1372_p10, %p1368_p6 }
  0x3e   : > { %v1683_v49 = vadd.f32 %v518_v45, %v1599_v1  ;;  %v1693_v56 = vadd.f32 %v518_v45, %v1601_v2  ;;  %v1696_v57 = vadd.f32 %v1601_v2, %v240_v53  ;;  %v241_v63 = vperm.slane %v233_v58, 0 }
  0x3f   : > { %567 = vadd.xlane.f32.xlu0 %v548_v21  ;;  %565 = vadd.xlane.f32.xlu1 %v547_v22  ;;  %v263_v52 = vmul.f32 %v1679_v47, %v1679_v47  ;;  %v1700_v59 = vadd.f32 %v519_v55, %v1599_v1  ;;  %v242_v5 = vperm.slane %v234_v60, 0  ;;  %v1710_v6 = vadd.f32 %v519_v55, %v1601_v2 }
  0x40   : > { %571 = vadd.xlane.f32.xlu2 %v550_v24  ;;  %v556_v54 = vmul.f32 %v1683_v49, %v1683_v49  ;;  %v555_v61 = vmul.f32 %v1693_v56, %v1693_v56  ;;  %v264_v62 = vmul.f32 %v1696_v57, %v1696_v57  ;;  %v1713_v7 = vadd.f32 %v1601_v2, %v241_v63 }
  0x41   : > { %v558_v3 = vmul.f32 %v1700_v59, %v1700_v59  ;;  %v1717_v12 = vadd.f32 %v1601_v2, %v242_v5  ;;  %v235_v13 = vrot.slane %v1604_v4, 7  ;;  %v557_v14 = vmul.f32 %v1710_v6, %v1710_v6 }
  0x42   : > { %v265_v15 = vmul.f32 %v1713_v7, %v1713_v7  ;;  %v520_v18 = vperm.slane %v512_v10, 0 }
  0x43   : > { %v266_v20 = vmul.f32 %v1717_v12, %v1717_v12  ;;  %v243_v21 = vperm.slane %v235_v13, 0 }
  0x44   : > { %v1727_v0 = vadd.f32 %v520_v18, %v1599_v1  ;;  %v1730_v22 = vadd.f32 %v520_v18, %v1601_v2 }
  0x45   : > { %v1733_v4 = vadd.f32 %v1601_v2, %v243_v21 }
  0x46   : > { %v560_v23 = vmul.f32 %v1727_v0, %v1727_v0  ;;  %v559_v24 = vmul.f32 %v1730_v22, %v1730_v22 }
  0x47   : > { %569 = vadd.xlane.f32.xlu1 %v549_v31  ;;  %270 = vadd.xlane.f32.xlu0 %v261_v32  ;;  %v267_v25 = vmul.f32 %v1733_v4, %v1733_v4 }
  0x48   : > { %575 = vadd.xlane.f32.xlu2 %v552_v34 }
  0x4f   : > { %573 = vadd.xlane.f32.xlu1 %v551_v41  ;;  %272 = vadd.xlane.f32.xlu0 %v262_v42 }
  0x50   : > { %579 = vadd.xlane.f32.xlu2 %v554_v44 }
  0x57   : > { %577 = vadd.xlane.f32.xlu1 %v553_v51  ;;  %274 = vadd.xlane.f32.xlu0 %v263_v52 }
  0x58   : > { %583 = vadd.xlane.f32.xlu2 %v556_v54 }
  0x5f   : > { %581 = vadd.xlane.f32.xlu1 %v555_v61  ;;  %276 = vadd.xlane.f32.xlu0 %v264_v62 }
  0x60   : > { %587 = vadd.xlane.f32.xlu2 %v558_v3 }
  0x67   : > { %585 = vadd.xlane.f32.xlu1 %v557_v14  ;;  %278 = vadd.xlane.f32.xlu0 %v265_v15 }
  0x68   : > { %280 = vadd.xlane.f32.xlu2 %v266_v20 }
  0x6f   : > { %591 = vadd.xlane.f32.xlu1 %v560_v23  ;;  %589 = vadd.xlane.f32.xlu0 %v559_v24 }
  0x70   : > { %282 = vadd.xlane.f32.xlu2 %v267_v25 }
  0xaa   : > { %v564_v1 = vpop.xlane.xlu0 %563  ;;  %v562_v28 = vpop.xlane.xlu1 %561 }
  0xab   : > { %v594_v30 = vmax.f32 %v564_v1, 1e-24  ;;  %v593_v31 = vmax.f32 %v562_v28, 1e-24  ;;  %v269_v32 = vpop.xlane.xlu2 %268 }
  0xac   : > { %v1741_v33 = vmax.f32 %v269_v32, 1e-24 }
  0xad   : > { %1193 = vrsqrt.f32 %v594_v30  ;;  %vm625_vm1 = vweird.f32 %v594_v30  ;;  %vm615_vm5 = vweird.f32 %v593_v31 }
  0xae   : > { %1195 = vrsqrt.f32 %v593_v31  ;;  %vm298_vm7 = vweird.f32 %v1741_v33 }
  0xaf   : > { %1197 = vrsqrt.f32 %v1741_v33 }
  0xb2   : > { %v568_v2 = vpop.xlane.xlu0 %567  ;;  %v566_v34 = vpop.xlane.xlu1 %565 }
  0xb3   : > { %v1194_v35 = vpop.eup %1193  ;;  %v596_v38 = vmax.f32 %v568_v2, 1e-24  ;;  %v1744_v40 = vmax.f32 %v566_v34, 1e-24  ;;  %v572_v41 = vpop.xlane.xlu2 %571 }
  0xb4   : > { %v1746_v42 = vpop.eup %1195  ;;  %v620_v43 = vmul.f32 %v1194_v35, %v594_v30  ;;  %v1754_v51 = vmax.f32 %v572_v41, 1e-24  ;;  %vm626_vm0 = vweird.f32 %v1194_v35 }
  0xb5   : > { %v1748_v44 = vpop.eup %1197  ;;  %v610_v45 = vmul.f32 %v1746_v42, %v593_v31  ;;  %1199 = vrsqrt.f32 %v596_v38  ;;  %vm1769_vm2 = vmor %vm625_vm1, %vm626_vm0  ;;  %vm616_vm3 = vweird.f32 %v1746_v42  ;;  %vm645_vm10 = vweird.f32 %v596_v38 }
  0xb6   : > { %v621_v48 = vmul.f32 %v1194_v35, %v620_v43  ;;  %v293_v50 = vmul.f32 %v1748_v44, %v1741_v33  ;;  %1201 = vrsqrt.f32 %v1744_v40  ;;  %vm299_vm4 = vweird.f32 %v1748_v44  ;;  %vm1783_vm6 = vmor %vm615_vm5, %vm616_vm3 }
  0xb7   : > { %v611_v52 = vmul.f32 %v1746_v42, %v610_v45  ;;  %1203 = vrsqrt.f32 %v1754_v51  ;;  %vm1792_vm9 = vmor %vm298_vm7, %vm299_vm4  ;;  %vm635_vm13 = vweird.f32 %v1744_v40  ;;  %vm665_vm1 = vweird.f32 %v1754_v51 }
  0xb8   : > { %v622_v53 = vmul.f32 0.5, %v621_v48  ;;  %v294_v54 = vmul.f32 %v1748_v44, %v293_v50 }
  0xb9   : > { %v612_v60 = vmul.f32 0.5, %v611_v52 }
  0xba   : > { %v570_v55 = vpop.xlane.xlu1 %569  ;;  %v623_v63 = vsub.f32 1.5, %v622_v53  ;;  %v295_v3 = vmul.f32 0.5, %v294_v54  ;;  %v271_v43 = vpop.xlane.xlu0 %270 }
  0xbb   : > { %v1200_v58 = vpop.eup %1199  ;;  %v1759_v61 = vmax.f32 %v570_v55, 1e-24  ;;  %v613_v14 = vsub.f32 1.5, %v612_v60  ;;  %v576_v50 = vpop.xlane.xlu2 %575  ;;  %v1802_v55 = vmax.f32 %v271_v43, 1e-24 }
  0xbc   : > { %v1761_v62 = vpop.eup %1201  ;;  %v640_v5 = vmul.f32 %v1200_v58, %v596_v38  ;;  %v624_v20 = vmul.f32 %v1194_v35, %v623_v63  ;;  %v296_v21 = vsub.f32 1.5, %v295_v3  ;;  %vm646_vm8 = vweird.f32 %v1200_v58 }
  0xbd   : > { %v630_v10 = vmul.f32 %v1761_v62, %v1744_v40  ;;  %1205 = vrsqrt.f32 %v1759_v61  ;;  %v1767_v18 = vpop.eup %1203  ;;  %v614_v28 = vmul.f32 %v1746_v42, %v613_v14  ;;  %vm1804_vm11 = vmor %vm645_vm10, %vm646_vm8  ;;  %vm636_vm12 = vweird.f32 %v1761_v62 }
  0xbe   : > { %v641_v13 = vmul.f32 %v1200_v58, %v640_v5  ;;  %v660_v32 = vmul.f32 %v1767_v18, %v1754_v51  ;;  %v628_v34 = vsel %vm1769_vm2, %v1194_v35, %v624_v20  ;;  %v297_v41 = vmul.f32 %v1748_v44, %v296_v21  ;;  %vm637_vm14 = vmor %vm635_vm13, %vm636_vm12 }
  0xbf   : > { %v631_v15 = vmul.f32 %v1761_v62, %v630_v10  ;;  %v770_v52 = vmul.f32 %v628_v34, %v1610_v8  ;;  %v618_v35 = vsel %vm1783_vm6, %v1746_v42, %v614_v28  ;;  %v396_v8 = vlaneseq }
  0xc0   : > { %v642_v23 = vmul.f32 0.5, %v641_v13  ;;  %v661_v31 = vmul.f32 %v1767_v18, %v660_v32  ;;  %v301_v33 = vsel %vm1792_vm9, %v1748_v44, %v297_v41  ;;  %v769_v3 = vmul.f32 %v618_v35, %v1613_v9 }
  0xc1   : > { %v632_v24 = vmul.f32 0.5, %v631_v15  ;;  %v1814_v38 = vmax.f32 %v576_v50, 1e-24  ;;  %v787_v44 = vmul.f32 1.442695, %v770_v52  ;;  %v372_v10 = vmul.f32 %v301_v33, %v1616_v11 }
  0xc2   : > { %v643_v25 = vsub.f32 1.5, %v642_v23  ;;  %v574_v63 = vpop.xlane.xlu1 %573  ;;  %v662_v13 = vmul.f32 0.5, %v661_v31  ;;  %1207 = vrsqrt.f32 %v1802_v55  ;;  %v1821_v20 = vshrl.u32 %v396_v8, 7 }
  0xc3   : > { %v1777_v2 = vpop.eup %1205  ;;  %v633_v30 = vsub.f32 1.5, %v632_v24  ;;  %v1819_v15 = vmax.f32 %v574_v63, 1e-24  ;;  %v785_v40 = vmul.f32 1.442695, %v769_v3  ;;  %1209 = vrsqrt.f32 %v1814_v38  ;;  %v273_v24 = vpop.xlane.xlu0 %272 }
  0xc4   : > { %v644_v48 = vmul.f32 %v1200_v58, %v643_v25  ;;  %v650_v54 = vmul.f32 %v1777_v2, %v1759_v61  ;;  %1211 = vpow2.f32 %v787_v44  ;;  %v380_v21 = vmul.f32 1.442695, %v372_v10  ;;  %v580_v1 = vpop.xlane.xlu2 %579 }
  0xc5   : > { %v634_v42 = vmul.f32 %v1761_v62, %v633_v30  ;;  %v663_v11 = vsub.f32 1.5, %v662_v13  ;;  %1213 = vrsqrt.f32 %v1819_v15  ;;  %v1829_v28 = vadd.s32 8, %v1821_v20 }
  0xc6   : > { %v648_v5 = vsel %vm1804_vm11, %v1200_v58, %v644_v48  ;;  %v651_v14 = vmul.f32 %v1777_v2, %v650_v54  ;;  %1215 = vpow2.f32 %v785_v40  ;;  %vm666_vm15 = vweird.f32 %v1767_v18 }
  0xc7   : > { %v772_v9 = vmul.f32 %v648_v5, %v1625_v16  ;;  %v638_v58 = vsel %vm637_vm14, %v1761_v62, %v634_v42  ;;  %v1834_v62 = vmax.f32 %v273_v24, 1e-24  ;;  %1217 = vpow2.f32 %v380_v21  ;;  %vm1849_vm2 = vmor %vm665_vm1, %vm666_vm15 }
  0xc8   : > { %v652_v23 = vmul.f32 0.5, %v651_v14  ;;  %v771_v25 = vmul.f32 %v638_v58, %v1628_v17  ;;  %v1831_v16 = vpop.eup %1207  ;;  %v664_v34 = vmul.f32 %v1767_v18, %v663_v11  ;;  %v1837_v30 = vmax.f32 %v580_v1, 1e-24 }
  0xc9   : > { %v791_v32 = vmul.f32 1.442695, %v772_v9  ;;  %v1839_v43 = vpop.eup %1209  ;;  %vm819_vm0 = vcmp.le.s32.totalorder %v1829_v28, 8  ;;  %v303_v50 = vmul.f32 %v1831_v16, %v1802_v55  ;;  %vm656_vm3 = vweird.f32 %v1777_v2 }
  0xca   : > { %v653_v41 = vsub.f32 1.5, %v652_v23  ;;  %v578_v17 = vpop.xlane.xlu1 %577  ;;  %v789_v45 = vmul.f32 1.442695, %v771_v25  ;;  %v1212_v48 = vpop.eup %1211  ;;  %v668_v51 = vsel %vm1849_vm2, %v1767_v18, %v664_v34  ;;  %v680_v54 = vmul.f32 %v1839_v43, %v1814_v38 }
  0xcb   : > { %1219 = vpow2.f32 %v791_v32  ;;  %v1845_v52 = vpop.eup %1213  ;;  %v1855_v53 = vmax.f32 %v578_v17, 1e-24  ;;  %v867_v8 = vsel %vm819_vm0, %v1212_v48, 0.0  ;;  %vm398_vm4 = vcmp.le.s32.totalorder %v1821_v20, 0 }
  0xcc   : > { %1221 = vrsqrt.f32 %v1834_v62  ;;  %v654_v31 = vmul.f32 %v1777_v2, %v653_v41  ;;  %v1216_v33 = vpop.eup %1215  ;;  %vm655_vm5 = vweird.f32 %v1759_v61  ;;  %v304_v42 = vmul.f32 %v1831_v16, %v303_v50  ;;  %v584_v14 = vpop.xlane.xlu2 %583 }
  0xcd   : > { %1223 = vrsqrt.f32 %v1837_v30  ;;  %v1218_v60 = vpop.eup %1217  ;;  %v670_v18 = vmul.f32 %v1845_v52, %v1819_v15  ;;  %v774_v63 = vmul.f32 %v668_v51, %v1632_v19  ;;  %vm1872_vm6 = vmor %vm655_vm5, %vm656_vm3  ;;  %v882_v44 = vadd.f32 %v1216_v33, %v867_v8 }
  0xce   : > { %1225 = vpow2.f32 %v789_v45  ;;  %vm821_vm7 = vcmp.le.s32.totalorder %v1829_v28, 9  ;;  %v658_v61 = vsel %vm1872_vm6, %v1777_v2, %v654_v31  ;;  %v681_v10 = vmul.f32 %v1839_v43, %v680_v54  ;;  %v275_v45 = vpop.xlane.xlu0 %274 }
  0xcf   : > { %1227 = vrsqrt.f32 %v1855_v53  ;;  %v422_v19 = vsel %vm398_vm4, %v1218_v60, 0.0  ;;  %v305_v58 = vmul.f32 0.5, %v304_v42  ;;  %v671_v40 = vmul.f32 %v1845_v52, %v670_v18 }
  0xd0   : > { %v795_v23 = vmul.f32 1.442695, %v774_v63  ;;  %v773_v24 = vmul.f32 %v658_v61, %v1642_v26  ;;  %v883_v2 = vrot.slane %v882_v44, 4  ;;  %v430_v1 = vrot.slane %v422_v19, 4 }
  0xd1   : > { %v1220_v5 = vpop.eup %1219  ;;  %v682_v32 = vmul.f32 0.5, %v681_v10  ;;  %v1890_v34 = vmax.f32 %v584_v14, 1e-24  ;;  %vm823_vm8 = vcmp.le.s32.totalorder %v1829_v28, 10  ;;  %v306_v50 = vsub.f32 1.5, %v305_v58 }
  0xd2   : > { %v1882_v13 = vpop.eup %1221  ;;  %v869_v11 = vsel %vm821_vm7, %v1220_v5, 0.0  ;;  %v672_v35 = vmul.f32 0.5, %v671_v40  ;;  %1229 = vpow2.f32 %v795_v23  ;;  %v793_v26 = vmul.f32 1.442695, %v773_v24  ;;  %v582_v60 = vpop.xlane.xlu1 %581 }
  0xd3   : > { %v1884_v9 = vpop.eup %1223  ;;  %v313_v25 = vmul.f32 %v1882_v13, %v1834_v62  ;;  %v884_v54 = vadd.f32 %v883_v2, %v882_v44  ;;  %v431_v33 = vadd.f32 %v430_v1, %v422_v19  ;;  %v683_v8 = vsub.f32 1.5, %v682_v32 }
  0xd4   : > { %v1226_v21 = vpop.eup %1225  ;;  %v700_v17 = vmul.f32 %v1884_v9, %v1837_v30  ;;  %1231 = vrsqrt.f32 %v1890_v34  ;;  %vm685_vm9 = vweird.f32 %v1814_v38  ;;  %vm308_vm10 = vweird.f32 %v1802_v55  ;;  %v588_v40 = vpop.xlane.xlu2 %587 }
  0xd5   : > { %v1892_v41 = vpop.eup %1227  ;;  %v889_v48 = vadd.f32 %v1226_v21, %v869_v11  ;;  %v314_v51 = vmul.f32 %v1882_v13, %v313_v25  ;;  %vm309_vm11 = vweird.f32 %v1831_v16  ;;  %v307_v63 = vmul.f32 %v1831_v16, %v306_v50 }
  0xd6   : > { %v690_v31 = vmul.f32 %v1892_v41, %v1855_v53  ;;  %v701_v42 = vmul.f32 %v1884_v9, %v700_v17  ;;  %v673_v3 = vsub.f32 1.5, %v672_v35  ;;  %v1906_v5 = vmax.f32 %v275_v45, 1e-24  ;;  %vm1917_vm13 = vmor %vm308_vm10, %vm309_vm11 }
  0xd7   : > { %v890_v18 = vrot.slane %v889_v48, 4  ;;  %1233 = vpow2.f32 %v793_v26  ;;  %v315_v44 = vmul.f32 0.5, %v314_v51  ;;  %v1909_v10 = vmax.f32 %v582_v60, 1e-24 }
  0xd8   : > { %v691_v61 = vmul.f32 %v1892_v41, %v690_v31  ;;  %v885_v19 = vrot.slane %v884_v54, 2  ;;  %v432_v14 = vrot.slane %v431_v33, 2  ;;  %v684_v58 = vmul.f32 %v1839_v43, %v683_v8  ;;  %v1230_v21 = vpop.eup %1229 }
  0xd9   : > { %vm686_vm12 = vweird.f32 %v1839_v43  ;;  %vm675_vm14 = vweird.f32 %v1819_v15  ;;  %vm676_vm15 = vweird.f32 %v1845_v52  ;;  %v702_v23 = vmul.f32 0.5, %v701_v42 }
  0xda   : > { %1235 = vrsqrt.f32 %v1906_v5  ;;  %v1924_v24 = vpop.eup %1231  ;;  %v1926_v25 = vadd.f32 %v890_v18, %v889_v48  ;;  %v311_v2 = vsel %vm1917_vm13, %v1831_v16, %v307_v63  ;;  %v674_v55 = vmul.f32 %v1845_v52, %v673_v3  ;;  %vm1935_vm0 = vmor %vm685_vm9, %vm686_vm12  ;;  %v277_v16 = vpop.xlane.xlu0 %276 }
  0xdb   : > { %1237 = vrsqrt.f32 %v1909_v10  ;;  %vm705_vm1 = vweird.f32 %v1837_v30  ;;  %v316_v32 = vsub.f32 1.5, %v315_v44  ;;  %v692_v17 = vmul.f32 0.5, %v691_v61  ;;  %vm1961_vm2 = vmor %vm675_vm14, %vm676_vm15 }
  0xdc   : > { %v720_v45 = vmul.f32 %v1924_v24, %v1890_v34  ;;  %v1942_v48 = vmax.f32 %v588_v40, 1e-24  ;;  %v1944_v50 = vadd.f32 %v885_v19, %v884_v54  ;;  %v1946_v35 = vadd.f32 %v432_v14, %v431_v33  ;;  %v586_v14 = vpop.xlane.xlu1 %585 }
  0xdd   : > { %v871_v38 = vsel %vm823_vm8, %v1230_v21, 0.0  ;;  %v688_v26 = vsel %vm1935_vm0, %v1839_v43, %v684_v58  ;;  %v1234_v51 = vpop.eup %1233  ;;  %v373_v31 = vmul.f32 %v311_v2, %v1645_v27  ;;  %v703_v8 = vsub.f32 1.5, %v702_v23 }
  0xde   : > { %v721_v60 = vmul.f32 %v1924_v24, %v720_v45  ;;  %1239 = vrsqrt.f32 %v1942_v48  ;;  %v892_v54 = vrot.slane %v1926_v25, 2  ;;  %vm706_vm3 = vweird.f32 %v1884_v9 }
  0xdf   : > { %vm319_vm4 = vweird.f32 %v1882_v13  ;;  %v1967_v27 = vmax.f32 %v277_v16, 1e-24  ;;  %v678_v42 = vsel %vm1961_vm2, %v1845_v52, %v674_v55  ;;  %v317_v18 = vmul.f32 %v1882_v13, %v316_v32  ;;  %vm2008_vm9 = vmor %vm705_vm1, %vm706_vm3 }
  0xe0   : > { %v1969_v43 = vpop.eup %1235  ;;  %v693_v63 = vsub.f32 1.5, %v692_v17  ;;  %v722_v15 = vmul.f32 0.5, %v721_v60  ;;  %v896_v44 = vadd.f32 %v1234_v51, %v871_v38  ;;  %v776_v61 = vmul.f32 %v688_v26, %v1649_v29 }
  0xe1   : > { %v1975_v3 = vpop.eup %1237  ;;  %vm318_vm5 = vweird.f32 %v1834_v62  ;;  %v323_v19 = vmul.f32 %v1969_v43, %v1906_v5  ;;  %v382_v58 = vmul.f32 1.442695, %v373_v31  ;;  %v704_v40 = vmul.f32 %v1884_v9, %v703_v8 }
  0xe2   : > { %v723_v21 = vsub.f32 1.5, %v722_v15  ;;  %v710_v52 = vmul.f32 %v1975_v3, %v1909_v10  ;;  %v775_v11 = vmul.f32 %v678_v42, %v1659_v36  ;;  %vm1987_vm6 = vmor %vm318_vm5, %vm319_vm4  ;;  %vm696_vm7 = vweird.f32 %v1892_v41 }
  0xe3   : > { %v324_v29 = vmul.f32 %v1969_v43, %v323_v19  ;;  %1241 = vrsqrt.f32 %v1967_v27  ;;  %vm399_vm8 = vcmp.le.s32.totalorder %v1821_v20, 1  ;;  %v321_v36 = vsel %vm1987_vm6, %v1882_v13, %v317_v18 }
  0xe4   : > { %v1994_v62 = vpop.eup %1239  ;;  %v694_v2 = vmul.f32 %v1892_v41, %v693_v63  ;;  %v711_v55 = vmul.f32 %v1975_v3, %v710_v52  ;;  %v2002_v1 = vmax.f32 %v586_v14, 1e-24  ;;  %v724_v17 = vmul.f32 %v1924_v24, %v723_v21  ;;  %v592_v51 = vpop.xlane.xlu1 %591 }
  0xe5   : > { %vm726_vm10 = vweird.f32 %v1924_v24  ;;  %v325_v45 = vmul.f32 0.5, %v324_v29  ;;  %v740_v13 = vmul.f32 %v1994_v62, %v1942_v48  ;;  %1243 = vpow2.f32 %v382_v58 }
  0xe6   : > { %v708_v16 = vsel %vm2008_vm9, %v1884_v9, %v704_v40  ;;  %vm695_vm11 = vweird.f32 %v1855_v53  ;;  %v712_v30 = vmul.f32 0.5, %v711_v55  ;;  %v799_v38 = vmul.f32 1.442695, %v776_v61  ;;  %v281_v61 = vpop.xlane.xlu2 %280 }
  0xe7   : > { %v374_v26 = vmul.f32 %v321_v36, %v1662_v37  ;;  %vm2023_vm12 = vmor %vm695_vm11, %vm696_vm7  ;;  %vm725_vm13 = vweird.f32 %v1890_v34  ;;  %v326_v31 = vsub.f32 1.5, %v325_v45  ;;  %v897_v8 = vrot.slane %v896_v44, 4 }
  0xe8   : > { %v698_v9 = vsel %vm2023_vm12, %v1892_v41, %v694_v2  ;;  %vm2031_vm14 = vmor %vm725_vm13, %vm726_vm10  ;;  %v741_v37 = vmul.f32 %v1994_v62, %v740_v13  ;;  %1245 = vrsqrt.f32 %v2002_v1  ;;  %v797_v33 = vmul.f32 1.442695, %v775_v11 }
  0xe9   : > { %v2037_v60 = vpop.eup %1241  ;;  %v778_v42 = vmul.f32 %v708_v16, %v1666_v39  ;;  %v728_v34 = vsel %vm2031_vm14, %v1924_v24, %v724_v17  ;;  %vm329_vm15 = vweird.f32 %v1969_v43  ;;  %v327_v41 = vmul.f32 %v1969_v43, %v326_v31 }
  0xea   : > { %v713_v18 = vsub.f32 1.5, %v712_v30  ;;  %v742_v63 = vmul.f32 0.5, %v741_v37  ;;  %v333_v15 = vmul.f32 %v2037_v60, %v1967_v27  ;;  %v434_v19 = vrot.slane %v1946_v35, 1 }
  0xeb   : > { %v2049_v14 = vadd.f32 %v892_v54, %v1926_v25  ;;  %v384_v39 = vmul.f32 1.442695, %v374_v26  ;;  %v777_v58 = vmul.f32 %v698_v9, %v1676_v46  ;;  %v1244_v40 = vpop.eup %1243  ;;  %vm825_vm0 = vcmp.le.s32.totalorder %v1829_v28, 11  ;;  %v279_v54 = vpop.xlane.xlu0 %278 }
  0xec   : > { %1247 = vpow2.f32 %v799_v38  ;;  %v780_v24 = vmul.f32 %v728_v34, %v1683_v49  ;;  %vm328_vm1 = vweird.f32 %v1906_v5  ;;  %v334_v21 = vmul.f32 %v2037_v60, %v333_v15 }
  0xed   : > { %v2056_v52 = vadd.f32 %v897_v8, %v896_v44  ;;  %1249 = vpow2.f32 %v797_v33  ;;  %v803_v11 = vmul.f32 1.442695, %v778_v42  ;;  %vm2060_vm2 = vmor %vm328_vm1, %vm329_vm15  ;;  %v743_v46 = vsub.f32 1.5, %v742_v63 }
  0xee   : > { %v2064_v23 = vpop.eup %1245  ;;  %vm400_vm3 = vcmp.le.s32.totalorder %v1821_v20, 2  ;;  %v331_v49 = vsel %vm2060_vm2, %v1969_v43, %v327_v41  ;;  %v714_v5 = vmul.f32 %v1975_v3, %v713_v18  ;;  %vm716_vm4 = vweird.f32 %v1975_v3 }
  0xef   : > { %v335_v44 = vmul.f32 0.5, %v334_v21  ;;  %v423_v29 = vsel %vm399_vm8, %v1244_v40, 0.0  ;;  %1251 = vpow2.f32 %v384_v39  ;;  %v801_v36 = vmul.f32 1.442695, %v777_v58 }
  0xf0   : > { %vm715_vm5 = vweird.f32 %v1909_v10  ;;  %v807_v2 = vmul.f32 1.442695, %v780_v24  ;;  %vm339_vm6 = vweird.f32 %v2037_v60  ;;  %v730_v32 = vmul.f32 %v2064_v23, %v2002_v1 }
  0xf1   : > { %v336_v55 = vsub.f32 1.5, %v335_v44  ;;  %1253 = vpow2.f32 %v803_v11  ;;  %v375_v43 = vmul.f32 %v331_v49, %v1679_v47  ;;  %vm2079_vm7 = vmor %vm715_vm5, %vm716_vm4  ;;  %v744_v45 = vmul.f32 %v1994_v62, %v743_v46 }
  0xf2   : > { %vm746_vm8 = vweird.f32 %v1994_v62  ;;  %v1248_v13 = vpop.eup %1247  ;;  %v718_v10 = vsel %vm2079_vm7, %v1975_v3, %v714_v5  ;;  %vm338_vm9 = vweird.f32 %v1967_v27  ;;  %v731_v30 = vmul.f32 %v2064_v23, %v730_v32 }
  0xf3   : > { %v337_v16 = vmul.f32 %v2037_v60, %v336_v55  ;;  %v1250_v47 = vpop.eup %1249  ;;  %v436_v38 = vrot.slane %v423_v29, 4  ;;  %1255 = vpow2.f32 %v801_v36  ;;  %vm745_vm10 = vweird.f32 %v1942_v48  ;;  %vm340_vm11 = vmor %vm338_vm9, %vm339_vm6  ;;  %v283_v48 = vpop.xlane.xlu2 %282 }
  0xf4   : > { %v2094_v26 = vmax.f32 %v281_v61, 1e-24  ;;  %vm827_vm12 = vcmp.le.s32.totalorder %v1829_v28, 12  ;;  %1257 = vpow2.f32 %v807_v2  ;;  %vm2099_vm13 = vmor %vm745_vm10, %vm746_vm8  ;;  %v732_v31 = vmul.f32 0.5, %v731_v30  ;;  %v590_v15 = vpop.xlane.xlu0 %589 }
  0xf5   : > { %v341_v3 = vsel %vm340_vm11, %v2037_v60, %v337_v16  ;;  %v2104_v8 = vmax.f32 %v279_v54, 1e-24  ;;  %v1252_v9 = vpop.eup %1251  ;;  %v386_v53 = vmul.f32 1.442695, %v375_v43  ;;  %v779_v37 = vmul.f32 %v718_v10, %v1693_v56 }
  0xf6   : > { %v748_v33 = vsel %vm2099_vm13, %v1994_v62, %v744_v45  ;;  %v376_v42 = vmul.f32 %v341_v3, %v1696_v57  ;;  %v733_v34 = vsub.f32 1.5, %v732_v31  ;;  %vm736_vm14 = vweird.f32 %v2064_v23 }
  0xf7   : > { %1259 = vrsqrt.f32 %v2094_v26  ;;  %v2113_v60 = vmax.f32 %v592_v51, 1e-24  ;;  %v1254_v41 = vpop.eup %1253  ;;  %v873_v18 = vsel %vm825_vm0, %v1248_v13, 0.0  ;;  %v2118_v56 = vmax.f32 %v283_v48, 1e-24 }
  0xf8   : > { %v388_v63 = vmul.f32 1.442695, %v376_v42  ;;  %1261 = vrsqrt.f32 %v2104_v8  ;;  %v2120_v62 = vadd.f32 %v436_v38, %v423_v29  ;;  %v734_v57 = vmul.f32 %v2064_v23, %v733_v34 }
  0xf9   : > { %vm735_vm15 = vweird.f32 %v2002_v1  ;;  %1263 = vrsqrt.f32 %v2113_v60  ;;  %v1256_v61 = vpop.eup %1255  ;;  %v2125_v39 = vadd.f32 %v1250_v47, %v873_v18  ;;  %v424_v58 = vsel %vm400_vm3, %v1252_v9, 0.0 }
  0xfa   : > { %1265 = vpow2.f32 %v386_v53  ;;  %v782_v40 = vmul.f32 %v748_v33, %v1700_v59  ;;  %vm737_vm0 = vmor %vm735_vm15, %vm736_vm14  ;;  %v1258_v24 = vpop.eup %1257  ;;  %v805_v21 = vmul.f32 1.442695, %v779_v37  ;;  %v2134_v1 = vmax.f32 %v590_v15, 1e-24 }
  0xfb   : > { %v738_v11 = vsel %vm737_vm0, %v2064_v23, %v734_v57  ;;  %1267 = vrsqrt.f32 %v2118_v56  ;;  %v887_v25 = vrot.slane %v1944_v50, 1  ;;  %v2140_v46 = vadd.f32 %v434_v19, %v1946_v35 }
  0xfc   : > { %1269 = vpow2.f32 %v388_v63  ;;  %v781_v59 = vmul.f32 %v738_v11, %v1710_v6  ;;  %v894_v49 = vrot.slane %v2049_v14, 1  ;;  %v442_v5 = vrot.slane %v424_v58, 4 }
  0xfd   : > { %v1260_v54 = vpop.eup %1259  ;;  %vm829_vm1 = vcmp.le.s32.totalorder %v1829_v28, 13  ;;  %1271 = vrsqrt.f32 %v2134_v1  ;;  %v899_v44 = vrot.slane %v2056_v52, 2  ;;  %vm401_vm2 = vcmp.le.s32.totalorder %v1821_v20, 3 }
  0xfe   : > { %v1262_v23 = vpop.eup %1261  ;;  %v811_v29 = vmul.f32 1.442695, %v782_v40  ;;  %v353_v35 = vmul.f32 %v1260_v54, %v2094_v26  ;;  %v438_v6 = vrot.slane %v2120_v62, 2  ;;  %v904_v36 = vrot.slane %v2125_v39, 4 }
  0xff   : > { %v2149_v19 = vpop.eup %1263  ;;  %1273 = vpow2.f32 %v805_v21  ;;  %v343_v2 = vmul.f32 %v1262_v23, %v2104_v8  ;;  %v875_v32 = vsel %vm827_vm12, %v1254_v41, 0.0  ;;  %vm402_vm3 = vcmp.le.s32.totalorder %v1821_v20, 4 }
 0x100   : > { %v1266_v55 = vpop.eup %1265  ;;  %v809_v43 = vmul.f32 1.442695, %v781_v59  ;;  %v354_v17 = vmul.f32 %v1260_v54, %v353_v35  ;;  %v2159_v13 = vadd.f32 %v442_v5, %v424_v58  ;;  %v2161_v10 = vadd.f32 %v1256_v61, %v875_v32 }
 0x101   : > { %v2157_v45 = vpop.eup %1267  ;;  %vm831_vm4 = vcmp.le.s32.totalorder %v1829_v28, 14  ;;  %v344_v16 = vmul.f32 %v1262_v23, %v343_v2  ;;  %v760_v30 = vmul.f32 %v2149_v19, %v2113_v60  ;;  %v877_v38 = vsel %vm829_vm1, %v1258_v24, 0.0 }
 0x102   : > { %v1270_v47 = vpop.eup %1269  ;;  %1275 = vpow2.f32 %v811_v29  ;;  %v355_v51 = vmul.f32 0.5, %v354_v17  ;;  %vm358_vm5 = vweird.f32 %v2094_v26  ;;  %v425_v3 = vsel %vm401_vm2, %v1266_v55, 0.0 }
 0x103   : > { %v2169_v27 = vpop.eup %1271  ;;  %v345_v31 = vmul.f32 0.5, %v344_v16  ;;  %v761_v48 = vmul.f32 %v2149_v19, %v760_v30  ;;  %v363_v9 = vmul.f32 %v2157_v45, %v2118_v56  ;;  %1277 = vpow2.f32 %v809_v43 }
 0x104   : > { %v356_v53 = vsub.f32 1.5, %v355_v51  ;;  %vm359_vm6 = vweird.f32 %v1260_v54  ;;  %vm349_vm7 = vweird.f32 %v1262_v23  ;;  %v750_v41 = vmul.f32 %v2169_v27, %v2134_v1 }
 0x105   : > { %v1274_v37 = vpop.eup %1273  ;;  %v346_v33 = vsub.f32 1.5, %v345_v31  ;;  %v762_v42 = vmul.f32 0.5, %v761_v48  ;;  %v364_v34 = vmul.f32 %v2157_v45, %v363_v9  ;;  %v448_v18 = vrot.slane %v425_v3, 4  ;;  %vm360_vm9 = vmor %vm358_vm5, %vm359_vm6 }
 0x106   : > { %v426_v63 = vsel %vm402_vm3, %v1270_v47, 0.0  ;;  %v357_v15 = vmul.f32 %v1260_v54, %v356_v53  ;;  %vm348_vm8 = vweird.f32 %v2104_v8  ;;  %vm766_vm10 = vweird.f32 %v2149_v19 }
 0x107   : > { %v347_v57 = vmul.f32 %v1262_v23, %v346_v33  ;;  %v763_v61 = vsub.f32 1.5, %v762_v42  ;;  %v365_v58 = vmul.f32 0.5, %v364_v34  ;;  %v917_v24 = vadd.f32 %v1274_v37, %v877_v38  ;;  %vm350_vm11 = vmor %vm348_vm8, %vm349_vm7 }
 0x108   : > { %v1276_v40 = vpop.eup %1275  ;;  %v361_v21 = vsel %vm360_vm9, %v1260_v54, %v357_v15  ;;  %vm765_vm12 = vweird.f32 %v2113_v60  ;;  %v751_v11 = vmul.f32 %v2169_v27, %v750_v41  ;;  %v454_v59 = vrot.slane %v426_v63, 4 }
 0x109   : > { %v378_v8 = vmul.f32 %v361_v21, %v1717_v12  ;;  %v351_v5 = vsel %vm350_vm11, %v1262_v23, %v347_v57  ;;  %v764_v26 = vmul.f32 %v2149_v19, %v763_v61  ;;  %v1278_v29 = vpop.eup %1277  ;;  %vm767_vm13 = vmor %vm765_vm12, %vm766_vm10  ;;  %v366_v2 = vsub.f32 1.5, %v365_v58 }
 0x10a   : > { %v377_v35 = vmul.f32 %v351_v5, %v1713_v7  ;;  %vm369_vm14 = vweird.f32 %v2157_v45  ;;  %v752_v54 = vmul.f32 0.5, %v751_v11  ;;  %v449_v55 = vadd.f32 %v448_v18, %v425_v3 }
 0x10b   : > { %v392_v32 = vmul.f32 1.442695, %v378_v8  ;;  %v768_v60 = vsel %vm767_vm13, %v2149_v19, %v764_v26  ;;  %vm368_vm15 = vweird.f32 %v2118_v56  ;;  %v879_v12 = vsel %vm831_vm4, %v1276_v40, 0.0 }
 0x10c   : > { %v390_v23 = vmul.f32 1.442695, %v377_v35  ;;  %v784_v43 = vmul.f32 %v768_v60, %v1727_v0  ;;  %v367_v17 = vmul.f32 %v2157_v45, %v366_v2  ;;  %v455_v7 = vadd.f32 %v454_v59, %v426_v63  ;;  %vm370_vm0 = vmor %vm368_vm15, %vm369_vm14 }
 0x10d   : > { %1279 = vpow2.f32 %v392_v32  ;;  %v753_v16 = vsub.f32 1.5, %v752_v54  ;;  %vm756_vm1 = vweird.f32 %v2169_v27  ;;  %v444_v30 = vrot.slane %v2159_v13, 2 }
 0x10e   : > { %v924_v47 = vadd.f32 %v1278_v29, %v879_v12  ;;  %1281 = vpow2.f32 %v390_v23  ;;  %v371_v56 = vsel %vm370_vm0, %v2157_v45, %v367_v17  ;;  %v911_v28 = vrot.slane %v2161_v10, 4 }
 0x10f   : > { %v379_v19 = vmul.f32 %v371_v56, %v1733_v4  ;;  %v754_v0 = vmul.f32 %v2169_v27, %v753_v16  ;;  %vm755_vm2 = vweird.f32 %v2134_v1  ;;  %v900_v38 = vadd.f32 %v899_v44, %v2056_v52 }
 0x110   : > { %v450_v51 = vrot.slane %v449_v55, 2  ;;  %vm404_vm3 = vcmp.le.s32.totalorder %v1821_v20, 6  ;;  %v815_v3 = vmul.f32 1.442695, %v784_v43  ;;  %vm757_vm4 = vmor %vm755_vm2, %vm756_vm1  ;;  %v918_v31 = vrot.slane %v917_v24, 4 }
 0x111   : > { %v456_v48 = vrot.slane %v455_v7, 2  ;;  %v394_v45 = vmul.f32 1.442695, %v379_v19  ;;  %v758_v9 = vsel %vm757_vm4, %v2169_v27, %v754_v0  ;;  %v439_v4 = vadd.f32 %v438_v6, %v2120_v62 }
 0x112   : > { %v925_v53 = vrot.slane %v924_v47, 4  ;;  %vm403_vm5 = vcmp.le.s32.totalorder %v1821_v20, 5  ;;  %v783_v1 = vmul.f32 %v758_v9, %v1730_v22  ;;  %v905_v44 = vadd.f32 %v904_v36, %v2125_v39 }
 0x113   : > { %v1280_v52 = vpop.eup %1279  ;;  %v445_v37 = vadd.f32 %v444_v30, %v2159_v13  ;;  %v912_v33 = vadd.f32 %v911_v28, %v2161_v10  ;;  %1283 = vpow2.f32 %v394_v45  ;;  %v451_v42 = vadd.f32 %v450_v51, %v449_v55 }
 0x114   : > { %v1282_v27 = vpop.eup %1281  ;;  %v428_v62 = vsel %vm404_vm3, %v1280_v52, 0.0  ;;  %1285 = vpow2.f32 %v815_v3  ;;  %v813_v6 = vmul.f32 1.442695, %v783_v1  ;;  %vm486_vm6 = vcmask 1041409  }
 0x115   : > { %v919_v34 = vadd.f32 %v918_v31, %v917_v24  ;;  %v457_v22 = vadd.f32 %v456_v48, %v455_v7  ;;  %v466_v41 = vrot.slane %v428_v62, 4  ;;  %v427_v18 = vsel %vm403_vm5, %v1282_v27, 0.0 }
 0x116   : > { %vm488_vm7 = vcmask 1042434   ;;  %v440_v39 = vrot.slane %v439_v4, 1  ;;  %v926_v36 = vadd.f32 %v925_v53, %v924_v47  ;;  %v460_v13 = vrot.slane %v427_v18, 4 }
 0x117   : > { %1287 = vpow2.f32 %v813_v6  ;;  %vm490_vm8 = vcmask 1043459   ;;  %v906_v10 = vrot.slane %v905_v44, 2  ;;  %v446_v63 = vrot.slane %v445_v37, 1 }
 0x118   : > { %v913_v15 = vrot.slane %v912_v33, 2  ;;  %v467_v57 = vadd.f32 %v466_v41, %v428_v62  ;;  %v895_v61 = vadd.f32 %v894_v49, %v2049_v14  ;;  %v901_v58 = vrot.slane %v900_v38, 1 }
 0x119   : > { %v452_v40 = vrot.slane %v451_v42, 1  ;;  %v461_v24 = vadd.f32 %v460_v13, %v427_v18  ;;  %v1284_v20 = vpop.eup %1283  ;;  %vm492_vm9 = vcmask 1044484   ;;  %v920_v21 = vrot.slane %v919_v34, 2 }
 0x11a   : > { %v458_v11 = vrot.slane %v457_v22, 1  ;;  %v468_v59 = vrot.slane %v467_v57, 2  ;;  %v1286_v8 = vpop.eup %1285  ;;  %v441_v5 = vadd.f32 %v440_v39, %v439_v4  ;;  %v927_v26 = vrot.slane %v926_v36, 2 }
 0x11b   : > { %v462_v29 = vrot.slane %v461_v24, 2  ;;  %v472_v35 = vrot.slane %v1284_v20, 4  ;;  %v907_v2 = vadd.f32 %v906_v10, %v905_v44  ;;  %v447_v54 = vadd.f32 %v446_v63, %v445_v37 }
 0x11c   : > { %v914_v55 = vadd.f32 %v913_v15, %v912_v33  ;;  %v469_v32 = vadd.f32 %v468_v59, %v467_v57  ;;  %v902_v49 = vadd.f32 %v901_v58, %v900_v38  ;;  %v453_v60 = vadd.f32 %v452_v40, %v451_v42 }
 0x11d   : > { %v1288_v14 = vpop.eup %1287  ;;  %v463_v12 = vadd.f32 %v462_v29, %v461_v24  ;;  %v473_v23 = vadd.f32 %v1284_v20, %v472_v35  ;;  %v921_v43 = vadd.f32 %v920_v21, %v919_v34  ;;  %v459_v17 = vadd.f32 %v458_v11, %v457_v22 }
 0x11e   : > { %v470_v7 = vrot.slane %v469_v32, 1  ;;  %v931_v16 = vadd.f32 %v1288_v14, %v1286_v8  ;;  %v487_v30 = vsel %vm486_vm6, %v441_v5, %v2140_v46  ;;  %v928_v47 = vadd.f32 %v927_v26, %v926_v36 }
 0x11f   : > { %v464_v56 = vrot.slane %v463_v12, 1  ;;  %v474_v28 = vrot.slane %v473_v23, 2  ;;  %v908_v19 = vrot.slane %v907_v2, 1  ;;  %v489_v0 = vsel %vm488_vm7, %v447_v54, %v487_v30 }
 0x120   : > { %v915_v51 = vrot.slane %v914_v55, 1  ;;  %v932_v3 = vrot.slane %v931_v16, 4  ;;  %v491_v38 = vsel %vm490_vm8, %v453_v60, %v489_v0  ;;  %vm494_vm10 = vcmask 1045509  }
 0x121   : > { %v465_v31 = vadd.f32 %v464_v56, %v463_v12  ;;  %v475_v48 = vadd.f32 %v474_v28, %v473_v23  ;;  %v922_v45 = vrot.slane %v921_v43, 1  ;;  %v493_v9 = vsel %vm492_vm9, %v459_v17, %v491_v38 }
 0x122   : > { %v471_v4 = vadd.f32 %v470_v7, %v469_v32  ;;  %v933_v53 = vadd.f32 %v932_v3, %v931_v16  ;;  %v929_v46 = vrot.slane %v928_v47, 1  ;;  %vm496_vm11 = vcmask 1046534  }
 0x123   : > { %v476_v1 = vrot.slane %v475_v48, 1  ;;  %v495_v52 = vsel %vm494_vm10, %v465_v31, %v493_v9  ;;  %v888_v44 = vadd.f32 %v887_v25, %v1944_v50  ;;  %v909_v37 = vadd.f32 %v908_v19, %v907_v2 }
 0x124   : > { %v934_v33 = vrot.slane %v933_v53, 2  ;;  %vm498_vm12 = vcmask 1047559   ;;  %v916_v27 = vadd.f32 %v915_v51, %v914_v55  ;;  %v923_v6 = vadd.f32 %v922_v45, %v921_v43 }
 0x125   : > { %v477_v42 = vadd.f32 %v476_v1, %v475_v48  ;;  %v946_v62 = vsel %vm486_vm6, %v895_v61, %v888_v44  ;;  %v497_v22 = vsel %vm496_vm11, %v471_v4, %v495_v52  ;;  %v930_v25 = vadd.f32 %v929_v46, %v928_v47 }
 0x126   : > { %v935_v34 = vadd.f32 %v934_v33, %v933_v53  ;;  %v947_v50 = vsel %vm488_vm7, %v902_v49, %v946_v62 }
 0x127   : > { %v499_v41 = vsel %vm498_vm12, %v477_v42, %v497_v22  ;;  %v948_v18 = vsel %vm490_vm8, %v909_v37, %v947_v50 }
 0x128   : > { %v936_v39 = vrot.slane %v935_v34, 1  ;;  %501 = vst [vmem:[%s225_s26] sm:$0xff] %v499_v41  ;;  %v949_v36 = vsel %vm492_vm9, %v916_v27, %v948_v18 }
 0x129   : > { %v950_v10 = vsel %vm494_vm10, %v923_v6, %v949_v36 }
 0x12a   : > { %v937_v13 = vadd.f32 %v936_v39, %v935_v34  ;;  %v951_v63 = vsel %vm496_vm11, %v930_v25, %v950_v10 }
 0x12c   : > { %v952_v15 = vsel %vm498_vm12, %v937_v13, %v951_v63 }
 0x12d   : > { %954 = vst [vmem:[%s225_s26 + $0x8] sm:$0xff] %v952_v15 }
 0x12e   : > { %1376 = shalt.err (!%p1373_p11)
}
 0x12f   : > { %s1456_s15 = smov 128   ;;  %s1457_s8 = smov 256  }
 0x130   : > { %s1458_s0 = smov 8  }
 0x131   : > { %1108 = dma.vmem_to_hbm [thread:$0]  (%p1539_p9), %s970_s27, 256, %s972_s4, %s956_s6, %s1456_s15, %s1457_s8, %s1458_s0  }
 0x132 PF: > { %p1122_p13 = scmp.ge.s32.totalorder %s1451_s16, 2  ;;  %s986_s19 = sand.u32 1, %s1423_s9  }
 0x133   : > { %s987_s20 = scalar_lea.sflag [#allocation4], %s986_s19 }
 0x134   : > { %p1118_p0 = pnand %p1122_p13, %p1545_p12 }
 0x136   : > { %p1119_p1 = pneg %p1118_p0 }
 0x138   : > { %1418 = dma.done.wait (%p1119_p1), %s987_s20, 256  }
 0x139   : > { %1420 = vsyncadd (%p1119_p1), %s987_s20, 4294967040  ;;  %s21_s16 = sadd.s32 1, %s1451_s16   ;;  %s2338_s13 = sld [smem:[#allocation11_spill]] }
 0x13a   : > { %p18_p2 = scmp.ge.s32.totalorder %s21_s16, 6   ;;  %s2339_s25 = sld [smem:[#allocation12_spill]] }
 0x13b   : > { %s2340_s15 = sld [smem:[#allocation13_spill]]  ;;  %s2341_s9 = smov %s1427_s10 }
 0x13c   : > { %s2342_s10 = smov %s1431_s11  ;;  %s2343_s11 = smov %s1554_s30 }
 0x13d   : > { %s2344_s12 = smov %s1443_s14  ;;  %20 = sbr.rel (!%p18_p2) target bundleno = 11 (0xb), region = 86 }
 0x140   : > { %s2345_s14 = smov %s2339_s25 }
 0x142   :  { %993 = vsyncpa [#allocation3], 1 }
 0x143   :  { %995 = vsyncpa [#allocation3 + $0x1], 1 }
 0x144   :  { %996 = vsyncpa [#allocation6], 1 }
 0x145   :  { %998 = vsyncpa [#allocation6 + $0x1], 1 }
 0x146   :  { %999 = vsyncpa [#allocation4], 1 }
 0x147   :  { %1001 = vsyncpa [#allocation4 + $0x1], 1 }

</bundles_post_ra>
